<compile_context>
chip_gen: v7x
topology: tpu7x:2x2x1
jax: 0.10.0
libtpu: 0.0.40
codegen_flags: <defaults>
</compile_context>

<pallas_src>
import jax
import jax.numpy as jnp
from jax.experimental import pallas as pl
from jax.experimental.pallas import tpu as pltpu


def lr_dp_kernel(x_ref, w_ref, s_ref, b_ref, n_ref,
                 pred_ref, sums_ref,
                 acc_p, acc_ps, acc_s):
    i = pl.program_id(0)

    @pl.when(i == 0)
    def _():
        acc_p[...] = jnp.zeros_like(acc_p)
        acc_ps[...] = jnp.zeros_like(acc_ps)
        acc_s[...] = jnp.zeros_like(acc_s)

    # ---- fc1 + sigmoid, lane-dense: (1, D) x (TILE_N, D) contracted on D -> (1, TILE_N) ----
    x = x_ref[...]                      # (TILE_N, D)
    w = w_ref[...]                      # (1, D)
    logits = jax.lax.dot_general(
        w, x,
        dimension_numbers=(((1,), (1,)), ((), ())),
        preferred_element_type=jnp.float32)              # (1, TILE_N)
    pred = jax.nn.sigmoid(logits + b_ref[0])             # (1, TILE_N)
    pred_ref[...] = pred.astype(pred_ref.dtype)

    # ---- running sums for group statistics (mask out padded rows) ----
    tile_n = pred.shape[1]
    col = jax.lax.broadcasted_iota(jnp.int32, (1, tile_n), 1) + i * tile_n
    valid = (col < n_ref[0]).astype(jnp.float32)          # (1, TILE_N)

    s = s_ref[...].astype(jnp.float32) * valid            # (1, TILE_N)
    pm = pred * valid
    acc_p[...] += pm
    acc_ps[...] += pm * s
    acc_s[...] += s

    # ---- finalize: cross-lane reduce once, broadcast into a lane-dense output row ----
    @pl.when(i == pl.num_programs(0) - 1)
    def _():
        p_tot = jnp.sum(acc_p[...], axis=1, keepdims=True)    # (1, 1)
        ps_tot = jnp.sum(acc_ps[...], axis=1, keepdims=True)
        s_tot = jnp.sum(acc_s[...], axis=1, keepdims=True)
        sums = jnp.concatenate([p_tot, ps_tot, s_tot], axis=0)  # (3, 1)
        sums_ref[...] = jnp.broadcast_to(sums, sums_ref.shape)  # (3, 128)


def build_M_dp(num_classes=2):
    """Replicates the 'dp' branch of LR.__init__ exactly."""
    n_constraints = 2 * num_classes
    dim_condition = num_classes + 1
    M = [[0.0] * dim_condition for _ in range(n_constraints)]
    for i in range(n_constraints):
        j = i % 2
        if j == 0:
            M[i][j] = 1.0
            M[i][-1] = -1.0
        else:
            M[i][j - 1] = -1.0
            M[i][-1] = 1.0
    return jnp.asarray(M, dtype=jnp.float32)


def lr_forward(x, s, y, weight, bias, M, bound, fairness="dp", tile_n=512):
    """Returns (prediction (N,1), m_mu_q (n_constraints,)) matching LR.forward for 'dp'."""
    del y  # unused in the 'dp' fairness path (matches the PyTorch code)
    if fairness == "eo":
        # TODO(synk): 'eo' fairness path not implemented in-kernel.
        raise NotImplementedError("eo fairness path not implemented")
    assert M.shape[1] == 3, "kernel/wrapper assume dp with num_classes == 2 (dim_condition == 3)"

    N, D = x.shape

    # tile size: multiple of 128 lanes, capped at (padded) N; small enough to double-buffer
    # comfortably within the default scoped-VMEM budget on v5e/v6e/v7x.
    tile_n = max(128, (int(tile_n) // 128) * 128)
    tile_n = min(tile_n, ((N + 127) // 128) * 128)
    n_pad = ((N + tile_n - 1) // tile_n) * tile_n
    n_tiles = n_pad // tile_n

    xp = x if n_pad == N else jnp.pad(x, ((0, n_pad - N), (0, 0)))
    s_row = jnp.reshape(s.astype(jnp.float32), (1, N))
    if n_pad != N:
        s_row = jnp.pad(s_row, ((0, 0), (0, n_pad - N)))

    w_row = jnp.reshape(jnp.asarray(weight, jnp.float32), (1, D))
    b_arr = jnp.reshape(jnp.asarray(bias, jnp.float32), (1,))
    n_arr = jnp.array([N], dtype=jnp.int32)

    pred_row, sums_out = pl.pallas_call(
        lr_dp_kernel,
        out_shape=(
            jax.ShapeDtypeStruct((1, n_pad), jnp.float32),   # lane-dense prediction row
            jax.ShapeDtypeStruct((3, 128), jnp.float32),     # [sum_pred, sum_pred*s, sum_s]
        ),
        grid=(n_tiles,),
        in_specs=[
            pl.BlockSpec((tile_n, D), lambda i: (i, 0)),                 # x tile
            pl.BlockSpec((1, D), lambda i: (0, 0)),                      # fc1 weight (1, D)
            pl.BlockSpec((1, tile_n), lambda i: (0, i)),                 # s row tile
            pl.BlockSpec(memory_space=pltpu.MemorySpace.SMEM),           # bias (1,)
            pl.BlockSpec(memory_space=pltpu.MemorySpace.SMEM),           # true N (1,) int32
        ],
        out_specs=(
            pl.BlockSpec((1, tile_n), lambda i: (0, i)),                 # pred row tile
            pl.BlockSpec((3, 128), lambda i: (0, 0)),                    # sums (resident)
        ),
        scratch_shapes=[
            pltpu.VMEM((1, tile_n), jnp.float32),   # acc sum(pred)
            pltpu.VMEM((1, tile_n), jnp.float32),   # acc sum(pred * s)
            pltpu.VMEM((1, tile_n), jnp.float32),   # acc sum(s)
        ],
        compiler_params=pltpu.CompilerParams(
            dimension_semantics=("arbitrary",)),
    )(xp, w_row, s_row, b_arr, n_arr)

    prediction = pred_row[0, :N].reshape(N, 1)

    if fairness == "none":
        return prediction, None

    # ---- wrapper-side combine: mu_f and M @ (mu_f - bound) (tiny, O(1)) ----
    sum_p = sums_out[0, 0]
    sum_ps = sums_out[1, 0]
    sum_s = sums_out[2, 0]

    n_f = jnp.float32(N)
    cnt1 = sum_s
    cnt0 = n_f - sum_s
    # torch semantics: empty group -> out.mean() * 0 == 0
    mu0 = jnp.where(cnt0 == 0.0, 0.0, (sum_p - sum_ps) / jnp.maximum(cnt0, 1.0))
    mu1 = jnp.where(cnt1 == 0.0, 0.0, sum_ps / jnp.maximum(cnt1, 1.0))
    mean_all = sum_p / n_f
    mu = jnp.stack([mu0, mu1, mean_all])                    # (3,)
    m_mu_q = M @ (mu - jnp.float32(bound))                  # (n_constraints,)
    return prediction, m_mu_q


if __name__ == "__main__":
    key = jax.random.PRNGKey(0)
    kx, ks, ky, kw, kb = jax.random.split(key, 5)

    input_size = 64                       # fc1: Linear(2*input_size, 1)
    D = 2 * input_size                    # 128 features (lane aligned)
    N = 1000                              # not a tile multiple -> exercises padding+mask
    bound_val = 0.1

    x = jax.random.normal(kx, (N, D), dtype=jnp.float32)
    s = jax.random.bernoulli(ks, 0.5, (N, 1)).astype(jnp.float32)   # sensitive attr in {0,1}
    y = jax.random.bernoulli(ky, 0.5, (N, 1)).astype(jnp.float32)   # labels (unused for 'dp')

    weight = jax.random.normal(kw, (1, D), dtype=jnp.float32) * 0.05   # fc1.weight
    bias = jax.random.normal(kb, (1,), dtype=jnp.float32) * 0.05       # fc1.bias

    M = build_M_dp(num_classes=2)          # (4, 3)

    pred, m_mu_q = lr_forward(x, s, y, weight, bias, M, bound_val,
                              fairness="dp", tile_n=256)
    jax.block_until_ready((pred, m_mu_q))

    assert pred.shape == (N, 1)
    assert m_mu_q.shape == (4,)

    # ---- lightweight reference check (pure JAX) ----
    pred_ref = jax.nn.sigmoid(x @ weight.T + bias)          # (N, 1)
    mask0 = (s == 0.0).astype(jnp.float32)
    mask1 = (s == 1.0).astype(jnp.float32)

    def gmean(mask):
        cnt = jnp.sum(mask)
        return jnp.where(cnt == 0.0, 0.0, jnp.sum(pred_ref * mask) / jnp.maximum(cnt, 1.0))

    mu_ref = jnp.stack([gmean(mask0), gmean(mask1), jnp.mean(pred_ref)])
    mmq_ref = M @ (mu_ref - jnp.float32(bound_val))

    assert jnp.allclose(pred, pred_ref, atol=5e-3, rtol=5e-3)
    assert jnp.allclose(m_mu_q, mmq_ref, atol=5e-3, rtol=5e-3)

    print("KERNEL_OK")
</pallas_src>

<mosaic_0001>
module attributes {stable_mosaic.version = 11 : i64} {
  func.func @lr_dp_kernel(%arg0: i32, %arg1: memref<256x128xf32, #tpu.memory_space<vmem>>, %arg2: memref<1x128xf32, #tpu.memory_space<vmem>>, %arg3: memref<1x256xf32, #tpu.memory_space<vmem>>, %arg4: memref<1xf32, #tpu.memory_space<smem>>, %arg5: memref<1xi32, #tpu.memory_space<smem>>, %arg6: memref<1x256xf32, #tpu.memory_space<vmem>>, %arg7: memref<3x128xf32, #tpu.memory_space<vmem>>, %arg8: memref<1x256xf32, #tpu.memory_space<vmem>>, %arg9: memref<1x256xf32, #tpu.memory_space<vmem>>, %arg10: memref<1x256xf32, #tpu.memory_space<vmem>>) attributes {dimension_semantics = [#tpu.dimension_semantics<arbitrary>], iteration_bounds = array<i64: 4>, scalar_prefetch = 0 : i64, scratch_operands = 3 : i64, tpu.core_type = #tpu.core_type<tc>, window_params = [{transform_indices = @transform_0, window_bounds = array<i64: 256, 128>}, {pipeline_mode = #tpu.pipeline_mode<synchronous>, transform_indices = @transform_1, window_bounds = array<i64: 1, 128>}, {transform_indices = @transform_2, window_bounds = array<i64: 1, 256>}, {transform_indices = @transform_3, window_bounds = array<i64: 1>}, {transform_indices = @transform_4, window_bounds = array<i64: 1>}, {transform_indices = @transform_5, window_bounds = array<i64: 1, 256>}, {pipeline_mode = #tpu.pipeline_mode<synchronous>, transform_indices = @transform_6, window_bounds = array<i64: 3, 128>}]} {
    %c0_i32 = arith.constant 0 : i32
    %0 = arith.cmpi eq, %arg0, %c0_i32 : i32
    %1 = arith.extui %0 : i1 to i32
    %c0_i32_0 = arith.constant 0 : i32
    %2 = arith.cmpi ne, %1, %c0_i32_0 : i32
    scf.if %2 {
      %cst_24 = arith.constant 0.000000e+00 : f32
      %40 = vector.broadcast %cst_24 : f32 to vector<1x256xf32>
      %c0_25 = arith.constant 0 : index
      %c0_26 = arith.constant 0 : index
      %41 = vector.load %arg8[%c0_25, %c0_26] : memref<1x256xf32, #tpu.memory_space<vmem>>, vector<1x256xf32>
      tpu.vector_store %arg8[%c0_25, %c0_26], %40 {strides = array<i32>} : memref<1x256xf32, #tpu.memory_space<vmem>>, vector<1x256xf32>,
      %cst_27 = arith.constant 0.000000e+00 : f32
      %42 = vector.broadcast %cst_27 : f32 to vector<1x256xf32>
      %c0_28 = arith.constant 0 : index
      %c0_29 = arith.constant 0 : index
      %43 = vector.load %arg9[%c0_28, %c0_29] : memref<1x256xf32, #tpu.memory_space<vmem>>, vector<1x256xf32>
      tpu.vector_store %arg9[%c0_28, %c0_29], %42 {strides = array<i32>} : memref<1x256xf32, #tpu.memory_space<vmem>>, vector<1x256xf32>,
      %cst_30 = arith.constant 0.000000e+00 : f32
      %44 = vector.broadcast %cst_30 : f32 to vector<1x256xf32>
      %c0_31 = arith.constant 0 : index
      %c0_32 = arith.constant 0 : index
      %45 = vector.load %arg10[%c0_31, %c0_32] : memref<1x256xf32, #tpu.memory_space<vmem>>, vector<1x256xf32>
      tpu.vector_store %arg10[%c0_31, %c0_32], %44 {strides = array<i32>} : memref<1x256xf32, #tpu.memory_space<vmem>>, vector<1x256xf32>,
    } else {
    }
    %c0 = arith.constant 0 : index
    %c0_1 = arith.constant 0 : index
    %3 = vector.load %arg1[%c0, %c0_1] : memref<256x128xf32, #tpu.memory_space<vmem>>, vector<256x128xf32>
    %c0_2 = arith.constant 0 : index
    %c0_3 = arith.constant 0 : index
    %4 = vector.load %arg2[%c0_2, %c0_3] : memref<1x128xf32, #tpu.memory_space<vmem>>, vector<1x128xf32>
    %cst = arith.constant dense<0.000000e+00> : vector<1x256xf32>
    %5 = tpu.matmul %4, %3, %cst {dimension_numbers = #tpu.dot_dimension_numbers<[1], [1], [0], [0], [0, 0, 1, 0], [], []>} : vector<1x128xf32>, vector<256x128xf32>, vector<1x256xf32> -> vector<1x256xf32>
    %c0_4 = arith.constant 0 : index
    %6 = memref.load %arg4[%c0_4] : memref<1xf32, #tpu.memory_space<smem>>
    %7 = vector.broadcast %6 : f32 to vector<1x256xf32>
    %8 = arith.addf %5, %7 : vector<1x256xf32>
    %9 = arith.negf %8 : vector<1x256xf32>
    %10 = math.exp %9 : vector<1x256xf32>
    %cst_5 = arith.constant 1.000000e+00 : f32
    %11 = vector.broadcast %cst_5 : f32 to vector<1x256xf32>
    %12 = arith.addf %11, %10 : vector<1x256xf32>
    %13 = arith.divf %11, %12 : vector<1x256xf32>
    %c0_6 = arith.constant 0 : index
    %c0_7 = arith.constant 0 : index
    %14 = vector.load %arg6[%c0_6, %c0_7] : memref<1x256xf32, #tpu.memory_space<vmem>>, vector<1x256xf32>
    tpu.vector_store %arg6[%c0_6, %c0_7], %13 {strides = array<i32>} : memref<1x256xf32, #tpu.memory_space<vmem>>, vector<1x256xf32>,
    %15 = tpu.iota {dimensions = array<i32: 1>} : vector<1x256xi32>
    %c256_i32 = arith.constant 256 : i32
    %16 = arith.muli %arg0, %c256_i32 : i32
    %17 = vector.broadcast %16 : i32 to vector<1x256xi32>
    %18 = arith.addi %15, %17 : vector<1x256xi32>
    %c0_8 = arith.constant 0 : index
    %19 = memref.load %arg5[%c0_8] : memref<1xi32, #tpu.memory_space<smem>>
    %20 = vector.broadcast %19 : i32 to vector<1x256xi32>
    %21 = arith.cmpi slt, %18, %20 : vector<1x256xi32>
    %22 = arith.extui %21 : vector<1x256xi1> to vector<1x256xi32>
    %23 = arith.sitofp %22 : vector<1x256xi32> to vector<1x256xf32>
    %c0_9 = arith.constant 0 : index
    %c0_10 = arith.constant 0 : index
    %24 = vector.load %arg3[%c0_9, %c0_10] : memref<1x256xf32, #tpu.memory_space<vmem>>, vector<1x256xf32>
    %25 = arith.mulf %24, %23 : vector<1x256xf32>
    %26 = arith.mulf %13, %23 : vector<1x256xf32>
    %c0_11 = arith.constant 0 : index
    %c0_12 = arith.constant 0 : index
    %27 = vector.load %arg8[%c0_11, %c0_12] : memref<1x256xf32, #tpu.memory_space<vmem>>, vector<1x256xf32>
    %28 = arith.addf %27, %26 : vector<1x256xf32>
    %c0_13 = arith.constant 0 : index
    %c0_14 = arith.constant 0 : index
    %29 = vector.load %arg8[%c0_13, %c0_14] : memref<1x256xf32, #tpu.memory_space<vmem>>, vector<1x256xf32>
    tpu.vector_store %arg8[%c0_13, %c0_14], %28 {strides = array<i32>} : memref<1x256xf32, #tpu.memory_space<vmem>>, vector<1x256xf32>,
    %c0_15 = arith.constant 0 : index
    %c0_16 = arith.constant 0 : index
    %30 = vector.load %arg9[%c0_15, %c0_16] : memref<1x256xf32, #tpu.memory_space<vmem>>, vector<1x256xf32>
    %31 = arith.mulf %26, %25 : vector<1x256xf32>
    %32 = arith.addf %30, %31 : vector<1x256xf32>
    %c0_17 = arith.constant 0 : index
    %c0_18 = arith.constant 0 : index
    %33 = vector.load %arg9[%c0_17, %c0_18] : memref<1x256xf32, #tpu.memory_space<vmem>>, vector<1x256xf32>
    tpu.vector_store %arg9[%c0_17, %c0_18], %32 {strides = array<i32>} : memref<1x256xf32, #tpu.memory_space<vmem>>, vector<1x256xf32>,
    %c0_19 = arith.constant 0 : index
    %c0_20 = arith.constant 0 : index
    %34 = vector.load %arg10[%c0_19, %c0_20] : memref<1x256xf32, #tpu.memory_space<vmem>>, vector<1x256xf32>
    %35 = arith.addf %34, %25 : vector<1x256xf32>
    %c0_21 = arith.constant 0 : index
    %c0_22 = arith.constant 0 : index
    %36 = vector.load %arg10[%c0_21, %c0_22] : memref<1x256xf32, #tpu.memory_space<vmem>>, vector<1x256xf32>
    tpu.vector_store %arg10[%c0_21, %c0_22], %35 {strides = array<i32>} : memref<1x256xf32, #tpu.memory_space<vmem>>, vector<1x256xf32>,
    %c3_i32 = arith.constant 3 : i32
    %37 = arith.cmpi eq, %arg0, %c3_i32 : i32
    %38 = arith.extui %37 : i1 to i32
    %c0_i32_23 = arith.constant 0 : i32
    %39 = arith.cmpi ne, %38, %c0_i32_23 : i32
    scf.if %39 {
      %c0_24 = arith.constant 0 : index
      %c0_25 = arith.constant 0 : index
      %40 = vector.load %arg8[%c0_24, %c0_25] : memref<1x256xf32, #tpu.memory_space<vmem>>, vector<1x256xf32>
      %cst_26 = arith.constant dense<0.000000e+00> : vector<1xf32>
      %41 = vector.multi_reduction <add>, %40, %cst_26 [1] : vector<1x256xf32> to vector<1xf32>
      %42 = vector.shape_cast %41 : vector<1xf32> to vector<1x1xf32>
      %c0_27 = arith.constant 0 : index
      %c0_28 = arith.constant 0 : index
      %43 = vector.load %arg9[%c0_27, %c0_28] : memref<1x256xf32, #tpu.memory_space<vmem>>, vector<1x256xf32>
      %cst_29 = arith.constant dense<0.000000e+00> : vector<1xf32>
      %44 = vector.multi_reduction <add>, %43, %cst_29 [1] : vector<1x256xf32> to vector<1xf32>
      %45 = vector.shape_cast %44 : vector<1xf32> to vector<1x1xf32>
      %c0_30 = arith.constant 0 : index
      %c0_31 = arith.constant 0 : index
      %46 = vector.load %arg10[%c0_30, %c0_31] : memref<1x256xf32, #tpu.memory_space<vmem>>, vector<1x256xf32>
      %cst_32 = arith.constant dense<0.000000e+00> : vector<1xf32>
      %47 = vector.multi_reduction <add>, %46, %cst_32 [1] : vector<1x256xf32> to vector<1xf32>
      %48 = vector.shape_cast %47 : vector<1xf32> to vector<1x1xf32>
      %49 = tpu.concatenate %42, %45, %48 in 0 : vector<1x1xf32>, vector<1x1xf32>, vector<1x1xf32> -> vector<3x1xf32>
      %50 = vector.shape_cast %49 : vector<3x1xf32> to vector<3x1xf32>
      %51 = vector.broadcast %50 : vector<3x1xf32> to vector<3x128xf32>
      %c0_33 = arith.constant 0 : index
      %c0_34 = arith.constant 0 : index
      %52 = vector.load %arg7[%c0_33, %c0_34] : memref<3x128xf32, #tpu.memory_space<vmem>>, vector<3x128xf32>
      tpu.vector_store %arg7[%c0_33, %c0_34], %51 {strides = array<i32>} : memref<3x128xf32, #tpu.memory_space<vmem>>, vector<3x128xf32>,
    } else {
    }
    return
  }
  func.func @transform_0(%arg0: i32) -> (i32, i32) {
    %c0_i32 = arith.constant 0 : i32
    %c0_i32_0 = arith.constant 0 : i32
    return %arg0, %c0_i32 : i32, i32
  }
  func.func @transform_1(%arg0: i32) -> (i32, i32) {
    %c0_i32 = arith.constant 0 : i32
    %c0_i32_0 = arith.constant 0 : i32
    %c0_i32_1 = arith.constant 0 : i32
    return %c0_i32, %c0_i32_0 : i32, i32
  }
  func.func @transform_2(%arg0: i32) -> (i32, i32) {
    %c0_i32 = arith.constant 0 : i32
    %c0_i32_0 = arith.constant 0 : i32
    return %c0_i32, %arg0 : i32, i32
  }
  func.func @transform_3(%arg0: i32) -> i32 {
    %c0_i32 = arith.constant 0 : i32
    %c0_i32_0 = arith.constant 0 : i32
    return %c0_i32 : i32
  }
  func.func @transform_4(%arg0: i32) -> i32 {
    %c0_i32 = arith.constant 0 : i32
    %c0_i32_0 = arith.constant 0 : i32
    return %c0_i32 : i32
  }
  func.func @transform_5(%arg0: i32) -> (i32, i32) {
    %c0_i32 = arith.constant 0 : i32
    %c0_i32_0 = arith.constant 0 : i32
    return %c0_i32, %arg0 : i32, i32
  }
  func.func @transform_6(%arg0: i32) -> (i32, i32) {
    %c0_i32 = arith.constant 0 : i32
    %c0_i32_0 = arith.constant 0 : i32
    %c0_i32_1 = arith.constant 0 : i32
    return %c0_i32, %c0_i32_0 : i32, i32
  }
}

</mosaic_0001>

<bundles_post_ra>
// kernel: tpu_custom_call.1
= control target key start
LH: loop header
LB: loop body
LE: loop exit
PB: predicated region body
PF: predicated region fallthrough
CT: control target
= control target key end

     0   :  { %s1329_s0 = inlined_call_operand.hbm [shape: f32[1024,128], index: 0, kind: input, shape index: {}]   ;;  %s1330_s1 = inlined_call_operand.vmem [shape: f32[1,128], index: 1, kind: input, shape index: {}]   ;;  %s1331_s2 = inlined_call_operand.vmem [shape: f32[1,1024], index: 2, kind: input, shape index: {}]   ;;  %s1332_s3 = inlined_call_operand.<no memory space> [shape: f32[1], index: 3, kind: input, shape index: {}]   ;;  %s1333_s4 = inlined_call_operand.<no memory space> [shape: s32[1], index: 4, kind: input, shape index: {}]   ;;  %s1334_s5 = inlined_call_operand.hbm [shape: f32[1,1024], index: 5, kind: output, shape index: {0}]   ;;  %s1335_s6 = inlined_call_operand.hbm [shape: f32[3,128], index: 6, kind: output, shape index: {1}]  }
   0x1   :  { %12 = sst [smem:[#allocation5]] %s1332_s3 }
   0x2   :  { %13 = sst [smem:[#allocation6]] %s1333_s4 }
   0x3   :  { %14 = vsyncpa [#allocation8], 0 }
   0x4   :  { %16 = vsyncpa [#allocation8 + $0x1], 0 }
   0x5   :  { %17 = vsyncpa [#allocation9], 0 }
   0x6   :  { %19 = vsyncpa [#allocation9 + $0x1], 0 }
   0x7   :  { %20 = vsyncpa [#allocation12], 0  ;;  %s1065_s25 = smov 0   ;;  %s1067_s26 = smov 0  }
   0x8   :  { %s1069_s27 = smov 0   ;;  %s1071_s28 = smov 0  }
   0x9 LB: > { %s1086_s3 = sadd.s32 4294967295, %s1013_s28   ;;  %s726_s4 = sadd.s32 4294967294, %s1013_s28   ;;  %s1013_s28 = sphi %s1071_s28, %s1355_s28   ;;  %s1009_s27 = sphi %s1069_s27, %s1354_s27   ;;  %s1005_s26 = sphi %s1067_s26, %s1353_s26   ;;  %s1001_s25 = sphi %s1065_s25, %s1352_s25  }
   0xa   : > { %s1090_s29 = sadd.s32 1, %s1013_s28   ;;  %s33_s30 = sadd.s32 1, %s1009_s27 }
   0xb   : > { %s30_s7 = ssub.s32 %s1013_s28, %s1090_s29  ;;  %p40_p0 = scmp.ne.s32.totalorder %s1009_s27, %s1005_s26 }
   0xc   : > { %p31_p1 = scmp.eq.s32.totalorder %s30_s7, 0  ;;  %p41_p2 = scmp.eq.s32.totalorder %s1013_s28, 0 }
   0xd   : > { %p46_p3 = scmp.ne.s32.totalorder %s1005_s26, %s1001_s25  ;;  %p47_p4 = scmp.eq.s32.totalorder %s1086_s3, 0 }
   0xe   : > { %s1102_s8 = scalar_select %p31_p1, %s1009_s27, %s33_s30  }
   0xf   : > { %p1104_p5 = por %p41_p2, %p40_p0  ;;  %p1108_p6 = por %p47_p4, %p46_p3 }
  0x10   : > { %p1336_p7 = scmp.eq.s32.totalorder %s1086_s3, 3  ;;  %p165_p8 = scmp.eq.s32.totalorder %s726_s4, 3 }
  0x11   : > { %p834_p9 = scmp.lt.s32.totalorder %s1013_s28, 4  ;;  %s215_s13 = sand.u32 1, %s1009_s27  }
  0x12   : > { %p1116_p10 = por %p1336_p7, %p40_p0  ;;  %p1120_p11 = por %p165_p8, %p46_p3 }
  0x13   : > { %s750_s14 = sshll.u32 %s1013_s28, 12  ;;  %s729_s15 = sshll.u32 %s215_s13, 8 }
  0x14   : > { %s1340_s11 = scalar_select %p1116_p10, 1, 0 }
  0x15   : > { %s1341_s12 = scalar_select %p1120_p11, 1, 0 }
  0x16   : > { %s1129_s18 = scalar_lea.hbm %s1329_s0, %s750_s14  ;;  %s219_s19 = scalar_lea.vmem [#allocation7], %s729_s15 }
  0x17   : > { %s226_s20 = sshll.u32 %s219_s19, 4  ;;  %p1133_p12 = pnand %p834_p9, %p1104_p5  ;;  %s1137_s20 = int_to_ptr.vmem [resolvable:$true] %s226_s20 }
  0x18   : > { %s1139_s22 = scalar_lea.sflag [#allocation8], %s215_s13  ;;  %s887_s23 = scalar_lea.hbm %s1129_s18, 4096 }
  0x19   : > { %p888_p13 = scmp.ne.s32.totalorder %s1129_s18, %s887_s23  ;;  %p889_p0 = pneg %p1133_p12 }
  0x1a   : > { %s892_s30 = scalar_lea.hbm %s1329_s0, 16384  ;;  %p893_p3 = scmp.lt.u32.totalorder %s1129_s18, %s1329_s0 }
  0x1b   : > { %p890_p1 = pnand %p889_p0, %p888_p13  ;;  %p894_p4 = scmp.lt.u32.totalorder %s892_s30, %s887_s23 }
  0x1c   : > { %p896_p8 = scmp.lt.u32.totalorder %s887_s23, %s1129_s18 }
  0x1d   : > { %p891_p2 = pneg %p890_p1  ;;  %p895_p5 = por %p894_p4, %p893_p3 }
  0x1f   : > { %p897_p9 = por %p896_p8, %p895_p5 }
  0x21   : > { %p898_p7 = pnand %p897_p9, %p891_p2 }
  0x23   : > { %901 = shalt.err (!%p898_p7)
}
  0x24   : > { %s902_s13 = scalar_lea.vmem %s1137_s20, 4096  ;;  %s1015_s14 = smov [#allocation7]  }
  0x25   : > { %p903_p13 = scmp.ne.s32.totalorder %s1137_s20, %s902_s13  ;;  %s907_s15 = sshll.u32 %s1015_s14, 4  ;;  %s908_s15 = int_to_ptr.vmem [resolvable:$false] %s907_s15 }
  0x26   : > { %s909_s16 = scalar_lea.vmem %s908_s15, 8192  ;;  %p910_p10 = scmp.lt.s32.totalorder %s1137_s20, %s908_s15 }
  0x27   : > { %p905_p1 = pnand %p903_p13, %p889_p0  ;;  %p911_p3 = scmp.lt.s32.totalorder %s909_s16, %s902_s13 }
  0x29   : > { %p906_p11 = pneg %p905_p1  ;;  %p912_p4 = por %p911_p3, %p910_p10 }
  0x2b   : > { %p913_p5 = pnand %p912_p4, %p906_p11 }
  0x2d   : > { %916 = shalt.err (!%p913_p5)
}
  0x2e   : > { %s1016_s17 = smov 128   ;;  %s1017_s19 = smov 8  }
  0x2f   : > { %829 = dma.hbm_to_vmem [thread:$0]  (!%p1133_p12), %s1129_s18, 4096, %s1137_s20, %s1139_s22, %s1016_s17, %s1016_s17, %s1017_s19  }
  0x30   : > { %p732_p7 = scmp.ge.s32.totalorder %s1013_s28, 1  ;;  %p242_p0 = scmp.lt.s32.totalorder %s1013_s28, 5 }
  0x32   : > { %p243_p2 = pnand %p732_p7, %p242_p0 }
  0x33   : > { %s1170_s23 = sand.u32 (!%p243_p2), 1, %s1005_s26  }
  0x34   : > { %246 = sbr.rel (%p243_p2) target bundleno = 736 (0x2e0), region = 40  ;;  %s733_s24 = sshll.u32 (!%p243_p2), %s1170_s23, 8 }
  0x35   : > { %s249_s4 = scalar_lea.sflag (!%p243_p2), [#allocation8], %s1170_s23  ;;  %s1174_s30 = scalar_lea.vmem (!%p243_p2), [#allocation7], %s733_s24 }
  0x3b   : > { %988 = dma.done.wait (%p1108_p6), %s249_s4, 4096  }
  0x3c   : > { %990 = vsyncadd (%p1108_p6), %s249_s4, 4294963200  ;;  %s734_s18 = sshll.u32 %s1170_s23, 1  ;;  %s735_s20 = sshll.u32 %s1086_s3, 1 }
  0x3d   : > { %p287_p10 = scmp.lt.s32.totalorder %s735_s20, 7  ;;  %s1188_s9 = scalar_lea.vmem [#allocation10], %s734_s18 }
  0x3e   : > { %p736_p11 = scmp.ne.s32.totalorder %s1086_s3, 0 }
  0x3f   : > { %s1357_s20 = smov (!%p287_p10, %s735_s20), 7  ;;  %v296_v0 = vlaneseq (!%p736_p11)  ;;  %v1018_v1 = vmov (!%p736_p11), 0.0  }
  0x40   : > { %s289_s7 = scalar_lea.vmem %s1331_s2, %s1357_s20  ;;  %295 = sbr.rel (%p736_p11) target bundleno = 71 (0x47), region = 48 }
  0x41   : > { %vm298_vm0 = vcmp.lt.s32.totalorder (!%p736_p11), %v296_v0, 256 }
  0x42   : > { %300 = vst.msk [vmem:[#allocation2] sm:$0x3] (!%p736_p11), %vm298_vm0, %v1018_v1  ;;  %301 = vst.msk [vmem:[#allocation3] sm:$0x3] (!%p736_p11), %vm298_vm0, %v1018_v1 }
  0x43   : > { %302 = vst.msk [vmem:[#allocation4] sm:$0x3] (!%p736_p11), %vm298_vm0, %v1018_v1 }
  0x47 PF: > { %v319_v2 = vld [vmem:[%s1174_s30 + $0x80] sm:$0xff]  ;;  %v320_v3 = vld [vmem:[%s1174_s30 + $0x88] sm:$0xff]  ;;  %v321_v7 = vld [vmem:[%s1174_s30 + $0x90] sm:$0xff]  ;;  %v427_v51 = vlaneseq  ;;  %s451_s14 = sld [smem:[#allocation6]]  ;;  %s739_s15 = sshll.u32 %s1086_s3, 8  ;;  %v1020_v62 = vmov 0.0  }
  0x48   : > { %v303_v4 = vld [vmem:[%s1174_s30] sm:$0xff]  ;;  %v786_v5 = vpack.c.bf16 %v320_v3, %v319_v2  ;;  %v304_v6 = vld [vmem:[%s1174_s30 + $0x8] sm:$0xff]  ;;  %v322_v8 = vld [vmem:[%s1174_s30 + $0x98] sm:$0xff]  ;;  %v448_v54 = vstv %s739_s15  ;;  %v1019_v56 = vmov 1966171168   ;;  %s336_s19 = sld [smem:[#allocation5]] }
  0x49   : > { %v788_v9 = vpack.c.bf16 %v304_v6, %v303_v4  ;;  %v790_v10 = vpack.c.bf16 %v322_v8, %v321_v7  ;;  %v305_v11 = vld [vmem:[%s1174_s30 + $0x10] sm:$0xff]  ;;  %v306_v12 = vld [vmem:[%s1174_s30 + $0x18] sm:$0xff]  ;;  %v323_v13 = vld [vmem:[%s1174_s30 + $0xa0] sm:$0xff]  ;;  %v445_v52 = vand.u32 127, %v427_v51  ;;  %v425_v57 = vunpack.c.l.s4 %v1019_v56  ;;  %p742_p6 = scmp.ne.s32.totalorder %s1086_s3, 3 }
  0x4a   : > { %787 = vmatprep.subr.bf16.mxu0 %v786_v5  ;;  %v324_v14 = vld [vmem:[%s1174_s30 + $0xa8] sm:$0xff]  ;;  %v792_v15 = vpack.c.bf16 %v306_v12, %v305_v11  ;;  %v335_v17 = vld [vmem:[%s1330_s1] sm:$0x1]  ;;  %v307_v18 = vld [vmem:[%s1174_s30 + $0x20] sm:$0xff]  ;;  %v428_v61 = vshrl.u32 %v427_v51, 7  ;;  %vm1238_vm3 = vcmp.lt.s32.totalorder %v427_v51, 256 }
  0x4b   : > { %789 = vmatpush3.bf16.xpose.msra.mxu0 %v788_v9  ;;  %v794_v16 = vpack.c.bf16 %v324_v14, %v323_v13  ;;  %784 = vmatprep.mubr.f32.mxu0 %v335_v17  ;;  %v308_v19 = vld [vmem:[%s1174_s30 + $0x28] sm:$0xff]  ;;  %v325_v20 = vld [vmem:[%s1174_s30 + $0xb0] sm:$0xff]  ;;  %v326_v21 = vld [vmem:[%s1174_s30 + $0xb8] sm:$0xff]  ;;  %v446_v53 = vadd.s32 128, %v445_v52  ;;  %v449_v55 = vadd.s32 %v448_v54, %v445_v52  ;;  %v426_v60 = vunpack.c.0.s8 %v425_v57 }
  0x4c   : > { %791 = vmatprep.subr.bf16.mxu0 %v790_v10  ;;  %v796_v22 = vpack.c.bf16 %v308_v19, %v307_v18  ;;  %v798_v23 = vpack.c.bf16 %v326_v21, %v325_v20  ;;  %v309_v24 = vld [vmem:[%s1174_s30 + $0x30] sm:$0xff]  ;;  %v310_v25 = vld [vmem:[%s1174_s30 + $0x38] sm:$0xff]  ;;  %v327_v26 = vld [vmem:[%s1174_s30 + $0xc0] sm:$0xff]  ;;  %v1232_v7 = vsub.s32 0, %v428_v61  ;;  %v1234_v8 = vsub.s32 1, %v428_v61 }
  0x4d   : > { %v328_v27 = vld [vmem:[%s1174_s30 + $0xc8] sm:$0xff]  ;;  %v800_v28 = vpack.c.bf16 %v310_v25, %v309_v24  ;;  %v311_v30 = vld [vmem:[%s1174_s30 + $0x40] sm:$0xff]  ;;  %v329_v32 = vld [vmem:[%s1174_s30 + $0xd0] sm:$0xff]  ;;  %v450_v58 = vadd.s32 %v448_v54, %v446_v53  ;;  %v452_v59 = vstv %s451_s14  ;;  %v429_v1 = vsub.s32 %v426_v60, %v428_v61 }
  0x4e   : > { %v802_v29 = vpack.c.bf16 %v328_v27, %v327_v26  ;;  %v312_v31 = vld [vmem:[%s1174_s30 + $0x48] sm:$0xff]  ;;  %v330_v33 = vld [vmem:[%s1174_s30 + $0xd8] sm:$0xff]  ;;  %v313_v36 = vld [vmem:[%s1174_s30 + $0x50] sm:$0xff]  ;;  %vm453_vm1 = vcmp.lt.s32.totalorder %v449_v55, %v452_v59  ;;  %v337_v14 = vstv %s336_s19  ;;  %vm555_vm4 = vcmask (!%p742_p6), 1040384  }
  0x4f   : > { %v804_v34 = vpack.c.bf16 %v312_v31, %v311_v30  ;;  %v806_v35 = vpack.c.bf16 %v330_v33, %v329_v32  ;;  %v314_v37 = vld [vmem:[%s1174_s30 + $0x58] sm:$0xff]  ;;  %v331_v38 = vld [vmem:[%s1174_s30 + $0xe0] sm:$0xff]  ;;  %v332_v39 = vld [vmem:[%s1174_s30 + $0xe8] sm:$0xff]  ;;  %vm454_vm2 = vcmp.lt.s32.totalorder %v450_v58, %v452_v59  ;;  %v740_v63 = vsel %vm453_vm1, 1.0, %v1020_v62 }
  0x50   : > { %v808_v40 = vpack.c.bf16 %v314_v37, %v313_v36  ;;  %v810_v41 = vpack.c.bf16 %v332_v39, %v331_v38  ;;  %v315_v42 = vld [vmem:[%s1174_s30 + $0x60] sm:$0xff]  ;;  %v316_v43 = vld [vmem:[%s1174_s30 + $0x68] sm:$0xff]  ;;  %v333_v44 = vld [vmem:[%s1174_s30 + $0xf0] sm:$0xff]  ;;  %v741_v0 = vsel %vm454_vm2, 1.0, %v1020_v62  ;;  %v1021_v62 = vmov (!%p742_p6), 0  }
  0x51   : > { %v334_v45 = vld [vmem:[%s1174_s30 + $0xf8] sm:$0xff]  ;;  %v812_v46 = vpack.c.bf16 %v316_v43, %v315_v42  ;;  %v317_v48 = vld [vmem:[%s1174_s30 + $0x70] sm:$0xff]  ;;  %v462_v2 = vcombine.low %v740_v63, %v741_v0  ;;  %885 = vset.pattern.permute.xlu1 (!%p742_p6), %v1021_v62  ;;  %886 = vset.pattern.permute.xlu0 (!%p742_p6), %v1021_v62  ;;  %vm602_vm5 = vcmask (!%p742_p6), 1041408  }
  0x52   : > { %v814_v47 = vpack.c.bf16 %v334_v45, %v333_v44  ;;  %v318_v49 = vld [vmem:[%s1174_s30 + $0x78] sm:$0xff] }
  0x53   : > { %793 = vmatpush3.bf16.xpose.msra.mxu0 %v792_v15  ;;  %v816_v50 = vpack.c.bf16 %v318_v49, %v317_v48  ;;  %v469_v3 = vrot.slane %v462_v2, %v429_v1  ;;  %v459_v5 = vld [vmem:[%s289_s7] sm:$0x3]  ;;  %v536_v11 = vld [vmem:[#allocation4] sm:$0x3] }
  0x54   : > { %795 = vmatprep.subr.bf16.mxu0 %v794_v16  ;;  %v481_v37 = vld [vmem:[#allocation2] sm:$0x3] }
  0x55   : > { %v476_v4 = vrot.slane %v469_v3, %v429_v1 }
  0x57   : > { %v478_v6 = vmul.f32 %v476_v4, %v459_v5 }
  0x59   : > { %v507_v9 = vrot.slane %v478_v6, %v1232_v7  ;;  %v511_v10 = vrot.slane %v478_v6, %v1234_v8  ;;  %v537_v12 = vadd.f32 %v536_v11, %v478_v6 }
  0x5b   : > { %797 = vmatpush3.bf16.xpose.msra.mxu0 %v796_v22  ;;  %538 = vst.msk [vmem:[#allocation4] sm:$0x3] %vm1238_vm3, %v537_v12 }
  0x5c   : > { %799 = vmatprep.subr.bf16.mxu0 %v798_v23 }
  0x63   : > { %801 = vmatpush3.bf16.xpose.msra.mxu0 %v800_v28 }
  0x64   : > { %803 = vmatprep.subr.bf16.mxu0 %v802_v29 }
  0x6b   : > { %805 = vmatpush3.bf16.xpose.msra.mxu0 %v804_v34 }
  0x6c   : > { %807 = vmatprep.subr.bf16.mxu0 %v806_v35 }
  0x73   : > { %809 = vmatpush3.bf16.xpose.msra.mxu0 %v808_v40  ;;  %v502_v40 = vld [vmem:[#allocation3] sm:$0x3] }
  0x74   : > { %811 = vmatprep.subr.bf16.mxu0 %v810_v41 }
  0x7b   : > { %813 = vmatpush3.bf16.xpose.msra.mxu0 %v812_v46 }
  0x7c   : > { %815 = vmatprep.subr.bf16.mxu0 %v814_v47 }
  0x83   : > { %817 = vmatpush3.bf16.xpose.msra.mxu0 %v816_v50  ;;  %v578_v50 = vld [vmem:[#allocation4] sm:$0x3] (!%p742_p6) }
  0x84   : > { %v583_v51 = vrot.slane (!%p742_p6), %v578_v50, %v1232_v7  ;;  %v587_v52 = vrot.slane (!%p742_p6), %v578_v50, %v1234_v8 }
  0x86   : > { %v590_v59 = vsel (!%p742_p6), %vm555_vm4, %v583_v51, 0.0  ;;  %v591_v60 = vsel (!%p742_p6), %vm555_vm4, %v587_v52, 0.0 }
  0x87   : > { %v592_v61 = vadd.f32 (!%p742_p6), %v591_v60, %v590_v59 }
  0x8a   : > { %785 = vmatmul.mubr.f32.vlgmr.msra.gmra.mrb[0].mxu0 %v335_v17 }
 0x15d   : > { %v404_v15 = vpop.f32.mrb[0].mxu0 }
 0x15e   : > { %v405_v16 = vadd.f32 %v404_v15, %v337_v14  ;;  %v406_v17 = vpop.f32.mrb[1].mxu0 }
 0x15f   : > { %v407_v18 = vadd.f32 %v406_v17, %v337_v14 }
 0x160   : > { %v737_v19 = vmul.f32 -1.442695, %v405_v16 }
 0x161   : > { %v738_v20 = vmul.f32 -1.442695, %v407_v18 }
 0x162   : > { %877 = vpow2.f32 %v737_v19 }
 0x163   : > { %879 = vpow2.f32 %v738_v20 }
 0x16c   : > { %v878_v21 = vpop.eup %877 }
 0x16d   : > { %v880_v22 = vpop.eup %879  ;;  %v415_v23 = vadd.f32 1.0, %v878_v21 }
 0x16e   : > { %v416_v24 = vadd.f32 1.0, %v880_v22 }
 0x16f   : > { %881 = vrcp.f32 %v415_v23 }
 0x170   : > { %883 = vrcp.f32 %v416_v24 }
 0x179   : > { %v882_v25 = vpop.eup %881 }
 0x17a   : > { %v884_v26 = vpop.eup %883  ;;  %v479_v27 = vmul.f32 %v882_v25, %v740_v63 }
 0x17b   : > { %v423_v28 = vcombine.low %v882_v25, %v884_v26  ;;  %v480_v29 = vmul.f32 %v884_v26, %v741_v0 }
 0x17c   : > { %v514_v30 = vmul.f32 %v507_v9, %v479_v27 }
 0x17d   : > { %v430_v31 = vrot.slane %v423_v28, %v429_v1  ;;  %v484_v32 = vcombine.low %v479_v27, %v480_v29  ;;  %v515_v33 = vmul.f32 %v511_v10, %v480_v29 }
 0x17f   : > { %v437_v34 = vrot.slane %v430_v31, %v429_v1  ;;  %v491_v35 = vrot.slane %v484_v32, %v429_v1  ;;  %v518_v36 = vcombine.low %v514_v30, %v515_v33 }
 0x181   : > { %443 = vst.msk [vmem:[%s1188_s9] sm:$0x3] %vm1238_vm3, %v437_v34  ;;  %v498_v38 = vrot.slane %v491_v35, %v429_v1  ;;  %v525_v39 = vrot.slane %v518_v36, %v429_v1  ;;  %542 = sbr.rel (%p742_p6) target bundleno = 682 (0x2aa), region = 52 }
 0x183   : > { %v500_v41 = vadd.f32 %v498_v38, %v481_v37  ;;  %v532_v42 = vrot.slane %v525_v39, %v429_v1 }
 0x185   : > { %501 = vst.msk [vmem:[#allocation2] sm:$0x3] %vm1238_vm3, %v500_v41  ;;  %v534_v43 = vadd.f32 %v532_v42, %v502_v40 }
 0x187   : > { %535 = vst.msk [vmem:[#allocation3] sm:$0x3] %vm1238_vm3, %v534_v43 }
 0x18c   : > { %v543_v45 = vld [vmem:[#allocation2] sm:$0x3] }
 0x18d   : > { %v548_v48 = vrot.slane %v543_v45, %v1232_v7  ;;  %v552_v49 = vrot.slane %v543_v45, %v1234_v8 }
 0x18e   : > { %v561_v44 = vld [vmem:[#allocation3] sm:$0x3] }
 0x18f   : > { %v566_v46 = vrot.slane %v561_v44, %v1232_v7  ;;  %v570_v47 = vrot.slane %v561_v44, %v1234_v8  ;;  %v556_v55 = vsel %vm555_vm4, %v548_v48, 0.0  ;;  %v557_v56 = vsel %vm555_vm4, %v552_v49, 0.0 }
 0x190   : > { %v558_v58 = vadd.f32 %v557_v56, %v556_v55 }
 0x191   : > { %v573_v53 = vsel %vm555_vm4, %v566_v46, 0.0  ;;  %v574_v54 = vsel %vm555_vm4, %v570_v47, 0.0 }
 0x192   : > { %v575_v57 = vadd.f32 %v574_v54, %v573_v53  ;;  %559 = vadd.xlane.f32.xlu1 %v558_v58 }
 0x194   : > { %576 = vadd.xlane.f32.xlu0 %v575_v57 }
 0x198   : > { %593 = vadd.xlane.f32.xlu0 %v592_v61 }
 0x21f   : > { %v560_v1 = vpop.xlane.xlu1 %559 }
 0x221   : > { %v577_v63 = vpop.xlane.xlu0 %576 }
 0x222   : > { %v596_v0 = vrot.slane %v577_v63, 7 }
 0x224   : > { %v601_v4 = vsel %vm555_vm4, %v560_v1, %v596_v0 }
 0x225   : > { %v594_v2 = vpop.xlane.xlu0 %593 }
 0x226   : > { %v599_v3 = vrot.slane %v594_v2, 6 }
 0x228   : > { %v603_v5 = vsel %vm602_vm5, %v601_v4, %v599_v3 }
 0x229   : > { %606 = vperm.xlu1 %885, %v603_v5  }
 0x2a8   : > { %v607_v6 = vpop.permute.xlu1 %606 }
 0x2a9   : > { %609 = vst [vmem:[#allocation11] sm:$0x7] %v607_v6 }
 0x2aa PF: > { %s751_s24 = sshll.u32 %s1086_s3, 5  ;;  %s625_s20 = sshll.u32 %s1188_s9, 4  ;;  %s626_s20 = int_to_ptr.vmem [resolvable:$true] %s625_s20 }
 0x2ab   : > { %s1269_s18 = scalar_lea.hbm %s1334_s5, %s751_s24  ;;  %s611_s21 = scalar_lea.sflag [#allocation9], %s1170_s23 }
 0x2ac   : > { %s917_s22 = scalar_lea.vmem %s626_s20, 32  ;;  %p1345_p8 = scmp.ne.s32.totalorder %s1340_s11, 0 }
 0x2ad   : > { %p918_p12 = scmp.ne.s32.totalorder %s626_s20, %s917_s22  ;;  %s1022_s7 = smov [#allocation10]  }
 0x2ae   : > { %s921_s10 = sshll.u32 %s1022_s7, 4  ;;  %s922_s10 = int_to_ptr.vmem [resolvable:$false] %s921_s10 }
 0x2af   : > { %p919_p9 = pnand %p918_p12, %p1345_p8  ;;  %s923_s13 = scalar_lea.vmem %s922_s10, 64 }
 0x2b0   : > { %p924_p1 = scmp.lt.s32.totalorder %s626_s20, %s922_s10  ;;  %p925_p3 = scmp.lt.s32.totalorder %s923_s13, %s917_s22 }
 0x2b1   : > { %p920_p13 = pneg %p919_p9 }
 0x2b2   : > { %p926_p4 = por %p925_p3, %p924_p1 }
 0x2b4   : > { %p927_p5 = pnand %p926_p4, %p920_p13 }
 0x2b6   : > { %930 = shalt.err (!%p927_p5)
}
 0x2b7   : > { %s931_s23 = scalar_lea.hbm %s1269_s18, 32  ;;  %s935_s15 = scalar_lea.hbm %s1334_s5, 128 }
 0x2b8   : > { %p932_p7 = scmp.ne.s32.totalorder %s1269_s18, %s931_s23  ;;  %p936_p10 = scmp.lt.u32.totalorder %s1269_s18, %s1334_s5 }
 0x2b9   : > { %p937_p11 = scmp.lt.u32.totalorder %s935_s15, %s931_s23  ;;  %p939_p12 = scmp.lt.u32.totalorder %s931_s23, %s1269_s18 }
 0x2ba   : > { %p933_p0 = pnand %p932_p7, %p1345_p8 }
 0x2bb   : > { %p938_p6 = por %p937_p11, %p936_p10 }
 0x2bc   : > { %p934_p2 = pneg %p933_p0 }
 0x2bd   : > { %p940_p9 = por %p939_p12, %p938_p6 }
 0x2bf   : > { %p941_p13 = pnand %p940_p9, %p934_p2 }
 0x2c1   : > { %944 = shalt.err (!%p941_p13)
}
 0x2c2   : > { %820 = dma.vmem_to_hbm [thread:$0]  (%p1345_p8), %s626_s20, 32, %s1269_s18, %s611_s21  }
 0x2c3   : > { %s1023_s19 = smov [#allocation11]   ;;  %p1346_p3 = scmp.eq.s32.totalorder %s1086_s3, 3 }
 0x2c4   : > { %s636_s24 = sshll.u32 %s1023_s19, 4  ;;  %s637_s24 = int_to_ptr.vmem [resolvable:$true] %s636_s24 }
 0x2c5   : > { %s945_s4 = scalar_lea.vmem %s637_s24, 64  ;;  %p952_p7 = scmp.lt.s32.totalorder %s637_s24, %s637_s24 }
 0x2c6   : > { %p946_p1 = scmp.ne.s32.totalorder %s637_s24, %s945_s4  ;;  %p953_p0 = scmp.lt.s32.totalorder %s945_s4, %s945_s4 }
 0x2c8   : > { %p947_p4 = pnand %p946_p1, %p1346_p3  ;;  %p954_p10 = por %p953_p0, %p952_p7 }
 0x2ca   : > { %p948_p5 = pneg %p947_p4 }
 0x2cc   : > { %p955_p11 = pnand %p954_p10, %p948_p5 }
 0x2ce   : > { %958 = shalt.err (!%p955_p11)
}
 0x2cf   : > { %s959_s11 = scalar_lea.hbm %s1335_s6, 64  ;;  %p1347_p2 = pmov %p1346_p3 }
 0x2d0   : > { %p960_p8 = scmp.ne.s32.totalorder %s1335_s6, %s959_s11  ;;  %p965_p9 = scmp.lt.u32.totalorder %s959_s11, %s1335_s6 }
 0x2d2   : > { %p961_p6 = pnand %p960_p8, %p1347_p2 }
 0x2d4   : > { %p962_p12 = pneg %p961_p6 }
 0x2d6   : > { %p967_p13 = pnand %p965_p9, %p962_p12 }
 0x2d8   : > { %970 = shalt.err (!%p967_p13)
}
 0x2d9   : > { %p1348_p1 = pmov %p1347_p2 }
 0x2db   : > { %822 = dma.vmem_to_hbm [thread:$0]  (%p1348_p1), %s637_s24, 64, %s1335_s6, [#allocation12]  }
 0x2dc   : > { %p1349_p3 = pmov %p1348_p1 }
 0x2dd   : > { %p1350_p4 = pmov %p1348_p1 }
 0x2de   : > { %992 = dma.done.wait (%p1349_p3), [#allocation12], 64  }
 0x2df   : > { %994 = vsyncadd (%p1350_p4), [#allocation12], 4294967232 }
 0x2e0 PF: > { %p837_p5 = scmp.ge.s32.totalorder %s1013_s28, 2  ;;  %s652_s23 = sand.u32 1, %s1001_s25  }
 0x2e1   : > { %p1351_p7 = scmp.ne.s32.totalorder %s1341_s12, 0  ;;  %s653_s9 = scalar_lea.sflag [#allocation9], %s652_s23 }
 0x2e3   : > { %p831_p0 = pnand %p837_p5, %p1351_p7 }
 0x2e5   : > { %996 = dma.done.wait (!%p831_p0), %s653_s9, 32  }
 0x2e6   : > { %998 = vsyncadd (!%p831_p0), %s653_s9, 4294967264  ;;  %p23_p10 = scmp.ge.s32.totalorder %s1090_s29, 6   ;;  %s1352_s25 = smov %s1005_s26 }
 0x2e7   : > { %s1353_s26 = smov %s1009_s27  ;;  %s1354_s27 = smov %s1102_s8 }
 0x2e8   : > { %s1355_s28 = smov %s1090_s29  ;;  %25 = sbr.rel (!%p23_p10) target bundleno = 9 (0x9), region = 104 }
 0x2ef   :  { %658 = vsyncpa [#allocation8], 1 }
 0x2f0   :  { %660 = vsyncpa [#allocation8 + $0x1], 1 }
 0x2f1   :  { %661 = vsyncpa [#allocation9], 1 }
 0x2f2   :  { %663 = vsyncpa [#allocation9 + $0x1], 1 }
 0x2f3   :  { %664 = vsyncpa [#allocation12], 1 }

</bundles_post_ra>
